<compile_context>
chip_gen: v6e
topology: v6e:2x2x1
jax: 0.10.0
libtpu: 0.0.40
codegen_flags: <defaults>
</compile_context>

<pallas_src>
import functools

import jax
import jax.numpy as jnp
from jax.experimental import pallas as pl
from jax.experimental.pallas import tpu as pltpu

LOG_STD_MIN = -5.0
LOG_STD_MAX = 2.0


def _round_up(x: int, m: int) -> int:
    return ((x + m - 1) // m) * m


def _make_actor_kernel(sample: bool, action_length: int, out_width: int):
    """Fused trunk + squashed-gaussian head kernel.

    Refs (sample=True):  x, w1, b1, w2, b2, w3, b3, eps, out
    Refs (sample=False): same without eps.
    Writes one packed, 128-lane-padded output slab: [action | mu | std | 0...].
    """
    A = action_length

    def body(x_ref, w1_ref, b1_ref, w2_ref, b2_ref, w3_ref, b3_ref,
             eps_ref, out_ref):
        # ---- MLP trunk: bf16 MXU inputs, f32 accumulation ----
        # TODO(synk): keep layer 1 in f32 if bit-level parity with PyTorch
        # matters; at K=obs it is essentially free on the MXU.
        h = jnp.dot(x_ref[...], w1_ref[...],
                    preferred_element_type=jnp.float32) + b1_ref[...]
        h = jnp.maximum(h, 0.0).astype(w2_ref.dtype)           # ReLU -> bf16
        h = jnp.dot(h, w2_ref[...],
                    preferred_element_type=jnp.float32) + b2_ref[...]
        h = jnp.maximum(h, 0.0).astype(w3_ref.dtype)           # ReLU -> bf16

        # Single (H, 2A) head matmul; mu / log_std split with static lane
        # slices (2A lanes fit inside one vreg; split is a cheap lane select).
        out = jnp.dot(h, w3_ref[...],
                      preferred_element_type=jnp.float32) + b3_ref[...]
        mu = out[:, :A]
        log_std = out[:, A:]

        # ---- squashed_gaussian head (f32 on VPU/EUP) ----
        log_std = jnp.tanh(log_std)
        log_std = LOG_STD_MIN + 0.5 * (LOG_STD_MAX - LOG_STD_MIN) * (log_std + 1.0)
        std = jnp.exp(log_std)

        if sample:
            pre_tanh = mu + std * eps_ref[...]   # reparameterized sample
        else:
            pre_tanh = mu                        # SquashedNormal mean
        action = jnp.tanh(pre_tanh)

        # One lane-dense 128-wide packed store: [action | mu | std | zeros].
        pieces = [action, mu, std]
        pad = out_width - 3 * A
        if pad > 0:
            pieces.append(jnp.zeros((action.shape[0], pad), jnp.float32))
        out_ref[...] = jnp.concatenate(pieces, axis=-1)

    if sample:
        return body

    def body_nosample(x_ref, w1_ref, b1_ref, w2_ref, b2_ref, w3_ref, b3_ref,
                      out_ref):
        return body(x_ref, w1_ref, b1_ref, w2_ref, b2_ref, w3_ref, b3_ref,
                    None, out_ref)

    return body_nosample


def prepare_params(params):
    """Pre-cast weights to bf16 ONCE (biases stay f32). Do this outside jit
    so every forward call does not pay an extra HBM round-trip for the cast."""
    w1, b1, w2, b2, w3, b3 = params
    return (w1.astype(jnp.bfloat16), b1,
            w2.astype(jnp.bfloat16), b2,
            w3.astype(jnp.bfloat16), b3)


@functools.partial(jax.jit, static_argnames=("action_length", "sample", "batch_tile"))
def gaussian_actor_forward(observation, prepared_params, eps=None, *,
                           action_length, sample=True, batch_tile=1024):
    """Runs the fused actor forward pass.

    prepared_params = prepare_params((w1, b1, w2, b2, w3, b3)),
    with w_i as [in, out] (bf16), b_i as [1, out] (f32).
    Returns (action, {"mu": mu, "std": std}), all float32 [B, A].
    """
    if sample and eps is None:
        raise ValueError("eps must be provided when sample=True")

    w1, b1, w2, b2, w3, b3 = prepared_params
    B, obs = observation.shape
    A = action_length
    H = w1.shape[1]

    x = observation.astype(jnp.bfloat16)

    # ---- batch tile selection ----
    # * 16-aligned (bf16 sublane tile is (16,128)).
    # * batch_tile (default 1024) keeps per-step compute large vs the ~0.35us
    #   per-step pipeline overhead while staying well under VMEM on v5e/v7x.
    # * when the whole batch would fit in one tile, keep >=2 parallel grid
    #   steps so both v7x TensorCores are used (negligible cost on v5e/v6e).
    assert batch_tile % 16 == 0
    B16 = _round_up(max(B, 16), 16)
    if B16 <= batch_tile:
        TB = _round_up(-(-B16 // 2), 16) if B16 >= 32 else B16
    else:
        TB = batch_tile
    Bp = _round_up(B, TB)
    if Bp != B:
        x = jnp.pad(x, ((0, Bp - B), (0, 0)))
        if sample:
            eps = jnp.pad(eps, ((0, Bp - B), (0, 0)))
    grid = (Bp // TB,)

    # Output slab padded to a 128-lane multiple: unmasked lane-dense stores
    # and lane-dense writeback DMA rows.
    OUT_W = _round_up(3 * A, 128)

    def row_spec(feat):
        return pl.BlockSpec((TB, feat), lambda i: (i, 0))

    def pinned_spec(arr):
        return pl.BlockSpec(arr.shape, lambda i: (0, 0))

    in_specs = [
        row_spec(obs),                       # x
        pinned_spec(w1), pinned_spec(b1),    # layer 1
        pinned_spec(w2), pinned_spec(b2),    # layer 2
        pinned_spec(w3), pinned_spec(b3),    # merged mu/log_std head
    ]
    operands = [x, w1, b1, w2, b2, w3, b3]
    if sample:
        in_specs.append(row_spec(A))         # eps only exists when sampled
        operands.append(eps)

    flops = 2 * Bp * (obs * H + H * H + H * 2 * A)
    bytes_in = (x.size * 2
                + (w1.size + w2.size + w3.size) * 2
                + (b1.size + b2.size + b3.size) * 4
                + (eps.size * 4 if sample else 0))
    bytes_out = Bp * OUT_W * 4

    packed = pl.pallas_call(
        _make_actor_kernel(sample, A, OUT_W),
        out_shape=jax.ShapeDtypeStruct((Bp, OUT_W), jnp.float32),
        grid=grid,
        in_specs=in_specs,
        out_specs=pl.BlockSpec((TB, OUT_W), lambda i: (i, 0)),
        compiler_params=pltpu.CompilerParams(
            dimension_semantics=("parallel",),
            vmem_limit_bytes=32 * 1024 * 1024,
        ),
        cost_estimate=pl.CostEstimate(
            flops=flops,
            transcendentals=3 * Bp * A,
            bytes_accessed=bytes_in + bytes_out,
        ),
    )(*operands)

    packed = packed[:B]
    action = packed[:, :A]
    mu = packed[:, A:2 * A]
    std = packed[:, 2 * A:3 * A]
    return action, {"mu": mu, "std": std}


def init_params(key, obs_len, action_len, hidden_dim):
    """Deterministic PyTorch-style Linear init: U(-1/sqrt(fan_in), 1/sqrt(fan_in))."""

    def linear(k, fan_in, fan_out):
        kw, kb = jax.random.split(k)
        bound = 1.0 / jnp.sqrt(float(fan_in))
        w = jax.random.uniform(kw, (fan_in, fan_out), jnp.float32, -bound, bound)
        b = jax.random.uniform(kb, (1, fan_out), jnp.float32, -bound, bound)
        return w, b

    k1, k2, k3 = jax.random.split(key, 3)
    w1, b1 = linear(k1, obs_len, hidden_dim)
    w2, b2 = linear(k2, hidden_dim, hidden_dim)
    w3, b3 = linear(k3, hidden_dim, 2 * action_len)
    return (w1, b1, w2, b2, w3, b3)


def _reference_forward(observation, params, eps, action_length, sample):
    """Pure-JAX f32 reference of the PyTorch module (for sanity checking)."""
    w1, b1, w2, b2, w3, b3 = params
    h = jnp.maximum(observation @ w1 + b1, 0.0)
    h = jnp.maximum(h @ w2 + b2, 0.0)
    out = h @ w3 + b3
    A = action_length
    mu, log_std = out[:, :A], out[:, A:]
    log_std = jnp.tanh(log_std)
    log_std = LOG_STD_MIN + 0.5 * (LOG_STD_MAX - LOG_STD_MIN) * (log_std + 1.0)
    std = jnp.exp(log_std)
    pre_tanh = mu + std * eps if sample else mu
    return jnp.tanh(pre_tanh), mu, std


if __name__ == "__main__":
    # Small shapes consistent with the module.
    batch = 8
    observation_length = 32
    action_length = 8
    hidden_dimension = 64
    # hidden_layers = 2  ->  Linear+ReLU, Linear+ReLU, Linear (as built above)

    key = jax.random.PRNGKey(0)
    k_obs, k_params, k_eps, k_obs2, k_eps2 = jax.random.split(key, 5)

    observation = jax.random.normal(
        k_obs, (batch, observation_length), dtype=jnp.float32)
    params = init_params(k_params, observation_length, action_length,
                         hidden_dimension)
    prepared = prepare_params(params)   # bf16 weights cached once
    # Reparameterization noise (glue in plain JAX; kernel consumes it).
    eps = jax.random.normal(k_eps, (batch, action_length), dtype=jnp.float32)

    # sample=True path (stochastic action via reparameterization).
    action, action_dict = gaussian_actor_forward(
        observation, prepared, eps, action_length=action_length, sample=True)
    jax.block_until_ready((action, action_dict))

    # sample=False path (deterministic mean action = tanh(mu)); eps not passed.
    action_mean, mean_dict = gaussian_actor_forward(
        observation, prepared, action_length=action_length, sample=False)
    jax.block_until_ready(action_mean)

    # Shape / range sanity checks.
    assert action.shape == (batch, action_length)
    assert action_dict["mu"].shape == (batch, action_length)
    assert action_dict["std"].shape == (batch, action_length)
    assert bool(jnp.all(jnp.abs(action) <= 1.0))
    assert bool(jnp.all(action_dict["std"] > 0.0))

    # Numerical check against the f32 reference (bf16 matmuls -> loose tol).
    ref_act, ref_mu, ref_std = _reference_forward(
        observation, params, eps, action_length, sample=True)
    assert bool(jnp.max(jnp.abs(action - ref_act)) < 5e-2)
    assert bool(jnp.max(jnp.abs(action_dict["mu"] - ref_mu)) < 5e-2)
    assert bool(jnp.max(jnp.abs(action_dict["std"] - ref_std)) < 5e-2)
    ref_act_m, _, _ = _reference_forward(
        observation, params, eps, action_length, sample=False)
    assert bool(jnp.max(jnp.abs(action_mean - ref_act_m)) < 5e-2)

    # Larger batch exercises the multi-step (grid >= 2) path.
    batch2 = 64
    observation2 = jax.random.normal(
        k_obs2, (batch2, observation_length), dtype=jnp.float32)
    eps2 = jax.random.normal(k_eps2, (batch2, action_length), dtype=jnp.float32)
    action2, dict2 = gaussian_actor_forward(
        observation2, prepared, eps2, action_length=action_length, sample=True)
    jax.block_until_ready(action2)
    ref_act2, ref_mu2, ref_std2 = _reference_forward(
        observation2, params, eps2, action_length, sample=True)
    assert action2.shape == (batch2, action_length)
    assert bool(jnp.max(jnp.abs(action2 - ref_act2)) < 5e-2)
    assert bool(jnp.max(jnp.abs(dict2["mu"] - ref_mu2)) < 5e-2)
    assert bool(jnp.max(jnp.abs(dict2["std"] - ref_std2)) < 5e-2)

    print("KERNEL_OK")
</pallas_src>

<mosaic_0001>
module attributes {stable_mosaic.version = 11 : i64} {
  func.func @body(%arg0: i32, %arg1: memref<16x32xbf16, #tpu.memory_space<vmem>>, %arg2: memref<32x64xbf16, #tpu.memory_space<vmem>>, %arg3: memref<1x64xf32, #tpu.memory_space<vmem>>, %arg4: memref<64x64xbf16, #tpu.memory_space<vmem>>, %arg5: memref<1x64xf32, #tpu.memory_space<vmem>>, %arg6: memref<64x16xbf16, #tpu.memory_space<vmem>>, %arg7: memref<1x16xf32, #tpu.memory_space<vmem>>, %arg8: memref<16x8xf32, #tpu.memory_space<vmem>>, %arg9: memref<16x128xf32, #tpu.memory_space<vmem>>) attributes {dimension_semantics = [#tpu.dimension_semantics<parallel>], iteration_bounds = array<i64: 1>, scalar_prefetch = 0 : i64, scratch_operands = 0 : i64, tpu.core_type = #tpu.core_type<tc>, window_params = [{transform_indices = @transform_0, window_bounds = array<i64: 16, 32>}, {pipeline_mode = #tpu.pipeline_mode<synchronous>, transform_indices = @transform_1, window_bounds = array<i64: 32, 64>}, {pipeline_mode = #tpu.pipeline_mode<synchronous>, transform_indices = @transform_2, window_bounds = array<i64: 1, 64>}, {pipeline_mode = #tpu.pipeline_mode<synchronous>, transform_indices = @transform_3, window_bounds = array<i64: 64, 64>}, {pipeline_mode = #tpu.pipeline_mode<synchronous>, transform_indices = @transform_4, window_bounds = array<i64: 1, 64>}, {pipeline_mode = #tpu.pipeline_mode<synchronous>, transform_indices = @transform_5, window_bounds = array<i64: 64, 16>}, {pipeline_mode = #tpu.pipeline_mode<synchronous>, transform_indices = @transform_6, window_bounds = array<i64: 1, 16>}, {transform_indices = @transform_7, window_bounds = array<i64: 16, 8>}, {transform_indices = @transform_8, window_bounds = array<i64: 16, 128>}]} {
    %c0 = arith.constant 0 : index
    %c0_0 = arith.constant 0 : index
    %0 = vector.load %arg1[%c0, %c0_0] : memref<16x32xbf16, #tpu.memory_space<vmem>>, vector<16x32xbf16>
    %c0_1 = arith.constant 0 : index
    %c0_2 = arith.constant 0 : index
    %1 = vector.load %arg2[%c0_1, %c0_2] : memref<32x64xbf16, #tpu.memory_space<vmem>>, vector<32x64xbf16>
    %cst = arith.constant dense<0.000000e+00> : vector<16x64xf32>
    %2 = tpu.matmul %0, %1, %cst {dimension_numbers = #tpu.dot_dimension_numbers<[1], [0], [0], [1], [0, 0, 1, 1], [], []>} : vector<16x32xbf16>, vector<32x64xbf16>, vector<16x64xf32> -> vector<16x64xf32>
    %c0_3 = arith.constant 0 : index
    %c0_4 = arith.constant 0 : index
    %3 = vector.load %arg3[%c0_3, %c0_4] : memref<1x64xf32, #tpu.memory_space<vmem>>, vector<1x64xf32>
    %4 = vector.broadcast %3 : vector<1x64xf32> to vector<16x64xf32>
    %5 = arith.addf %2, %4 : vector<16x64xf32>
    %cst_5 = arith.constant 0.000000e+00 : f32
    %6 = vector.broadcast %cst_5 : f32 to vector<16x64xf32>
    %7 = arith.maximumf %5, %6 : vector<16x64xf32>
    %8 = arith.truncf %7 : vector<16x64xf32> to vector<16x64xbf16>
    %c0_6 = arith.constant 0 : index
    %c0_7 = arith.constant 0 : index
    %9 = vector.load %arg4[%c0_6, %c0_7] : memref<64x64xbf16, #tpu.memory_space<vmem>>, vector<64x64xbf16>
    %cst_8 = arith.constant dense<0.000000e+00> : vector<16x64xf32>
    %10 = tpu.matmul %8, %9, %cst_8 {dimension_numbers = #tpu.dot_dimension_numbers<[1], [0], [0], [1], [0, 0, 1, 1], [], []>} : vector<16x64xbf16>, vector<64x64xbf16>, vector<16x64xf32> -> vector<16x64xf32>
    %c0_9 = arith.constant 0 : index
    %c0_10 = arith.constant 0 : index
    %11 = vector.load %arg5[%c0_9, %c0_10] : memref<1x64xf32, #tpu.memory_space<vmem>>, vector<1x64xf32>
    %12 = vector.broadcast %11 : vector<1x64xf32> to vector<16x64xf32>
    %13 = arith.addf %10, %12 : vector<16x64xf32>
    %cst_11 = arith.constant 0.000000e+00 : f32
    %14 = vector.broadcast %cst_11 : f32 to vector<16x64xf32>
    %15 = arith.maximumf %13, %14 : vector<16x64xf32>
    %16 = arith.truncf %15 : vector<16x64xf32> to vector<16x64xbf16>
    %c0_12 = arith.constant 0 : index
    %c0_13 = arith.constant 0 : index
    %17 = vector.load %arg6[%c0_12, %c0_13] : memref<64x16xbf16, #tpu.memory_space<vmem>>, vector<64x16xbf16>
    %cst_14 = arith.constant dense<0.000000e+00> : vector<16x16xf32>
    %18 = tpu.matmul %16, %17, %cst_14 {dimension_numbers = #tpu.dot_dimension_numbers<[1], [0], [0], [1], [0, 0, 1, 1], [], []>} : vector<16x64xbf16>, vector<64x16xbf16>, vector<16x16xf32> -> vector<16x16xf32>
    %c0_15 = arith.constant 0 : index
    %c0_16 = arith.constant 0 : index
    %19 = vector.load %arg7[%c0_15, %c0_16] : memref<1x16xf32, #tpu.memory_space<vmem>>, vector<1x16xf32>
    %20 = vector.broadcast %19 : vector<1x16xf32> to vector<16x16xf32>
    %21 = arith.addf %18, %20 : vector<16x16xf32>
    %22 = vector.extract_strided_slice %21 {offsets = [0, 0], sizes = [16, 8], strides = [1, 1]} : vector<16x16xf32> to vector<16x8xf32>
    %23 = vector.extract_strided_slice %21 {offsets = [0, 8], sizes = [16, 8], strides = [1, 1]} : vector<16x16xf32> to vector<16x8xf32>
    %24 = math.tanh %23 : vector<16x8xf32>
    %cst_17 = arith.constant 1.000000e+00 : f32
    %25 = vector.broadcast %cst_17 : f32 to vector<16x8xf32>
    %26 = arith.addf %24, %25 : vector<16x8xf32>
    %cst_18 = arith.constant 3.500000e+00 : f32
    %27 = vector.broadcast %cst_18 : f32 to vector<16x8xf32>
    %28 = arith.mulf %27, %26 : vector<16x8xf32>
    %cst_19 = arith.constant -5.000000e+00 : f32
    %29 = vector.broadcast %cst_19 : f32 to vector<16x8xf32>
    %30 = arith.addf %29, %28 : vector<16x8xf32>
    %31 = math.exp %30 : vector<16x8xf32>
    %c0_20 = arith.constant 0 : index
    %c0_21 = arith.constant 0 : index
    %32 = vector.load %arg8[%c0_20, %c0_21] : memref<16x8xf32, #tpu.memory_space<vmem>>, vector<16x8xf32>
    %33 = arith.mulf %31, %32 : vector<16x8xf32>
    %34 = arith.addf %22, %33 : vector<16x8xf32>
    %35 = math.tanh %34 : vector<16x8xf32>
    %cst_22 = arith.constant 0.000000e+00 : f32
    %36 = vector.broadcast %cst_22 : f32 to vector<16x104xf32>
    %37 = tpu.concatenate %35, %22, %31, %36 in 1 : vector<16x8xf32>, vector<16x8xf32>, vector<16x8xf32>, vector<16x104xf32> -> vector<16x128xf32>
    %c0_23 = arith.constant 0 : index
    %c0_24 = arith.constant 0 : index
    %38 = vector.load %arg9[%c0_23, %c0_24] : memref<16x128xf32, #tpu.memory_space<vmem>>, vector<16x128xf32>
    tpu.vector_store %arg9[%c0_23, %c0_24], %37 {strides = array<i32>} : memref<16x128xf32, #tpu.memory_space<vmem>>, vector<16x128xf32>,
    return
  }
  func.func @transform_0(%arg0: i32) -> (i32, i32) {
    %c0_i32 = arith.constant 0 : i32
    %c0_i32_0 = arith.constant 0 : i32
    return %arg0, %c0_i32 : i32, i32
  }
  func.func @transform_1(%arg0: i32) -> (i32, i32) {
    %c0_i32 = arith.constant 0 : i32
    %c0_i32_0 = arith.constant 0 : i32
    %c0_i32_1 = arith.constant 0 : i32
    return %c0_i32, %c0_i32_0 : i32, i32
  }
  func.func @transform_2(%arg0: i32) -> (i32, i32) {
    %c0_i32 = arith.constant 0 : i32
    %c0_i32_0 = arith.constant 0 : i32
    %c0_i32_1 = arith.constant 0 : i32
    return %c0_i32, %c0_i32_0 : i32, i32
  }
  func.func @transform_3(%arg0: i32) -> (i32, i32) {
    %c0_i32 = arith.constant 0 : i32
    %c0_i32_0 = arith.constant 0 : i32
    %c0_i32_1 = arith.constant 0 : i32
    return %c0_i32, %c0_i32_0 : i32, i32
  }
  func.func @transform_4(%arg0: i32) -> (i32, i32) {
    %c0_i32 = arith.constant 0 : i32
    %c0_i32_0 = arith.constant 0 : i32
    %c0_i32_1 = arith.constant 0 : i32
    return %c0_i32, %c0_i32_0 : i32, i32
  }
  func.func @transform_5(%arg0: i32) -> (i32, i32) {
    %c0_i32 = arith.constant 0 : i32
    %c0_i32_0 = arith.constant 0 : i32
    %c0_i32_1 = arith.constant 0 : i32
    return %c0_i32, %c0_i32_0 : i32, i32
  }
  func.func @transform_6(%arg0: i32) -> (i32, i32) {
    %c0_i32 = arith.constant 0 : i32
    %c0_i32_0 = arith.constant 0 : i32
    %c0_i32_1 = arith.constant 0 : i32
    return %c0_i32, %c0_i32_0 : i32, i32
  }
  func.func @transform_7(%arg0: i32) -> (i32, i32) {
    %c0_i32 = arith.constant 0 : i32
    %c0_i32_0 = arith.constant 0 : i32
    return %arg0, %c0_i32 : i32, i32
  }
  func.func @transform_8(%arg0: i32) -> (i32, i32) {
    %c0_i32 = arith.constant 0 : i32
    %c0_i32_0 = arith.constant 0 : i32
    return %arg0, %c0_i32 : i32, i32
  }
}

</mosaic_0001>

<bundles_post_ra>
// kernel: gaussian_actor_forward.1
= control target key start
LH: loop header
LB: loop body
LE: loop exit
PB: predicated region body
PF: predicated region fallthrough
CT: control target
= control target key end

     0   :  { %v434_v0 = vmov 0.0   ;;  %vm435_vm0 = vmmov 0   ;;  %vm60_vm1 = vcmask 261120   ;;  %vm147_vm2 = vcmask 523264   ;;  %s436_s27 = smov 8   ;;  %s548_s1 = inlined_call_operand.vmem [shape: bf16[32,64], index: 1, kind: input, shape index: {}]   ;;  %s549_s3 = inlined_call_operand.vmem [shape: bf16[64,64], index: 3, kind: input, shape index: {}]   ;;  %s550_s0 = inlined_call_operand.vmem [shape: bf16[16,32], index: 0, kind: input, shape index: {}]   ;;  %s551_s5 = inlined_call_operand.vmem [shape: bf16[64,16], index: 5, kind: input, shape index: {}]   ;;  %s552_s2 = inlined_call_operand.vmem [shape: f32[1,64], index: 2, kind: input, shape index: {}]   ;;  %s553_s7 = inlined_call_operand.vmem [shape: f32[16,8], index: 7, kind: input, shape index: {}]   ;;  %s554_s4 = inlined_call_operand.vmem [shape: f32[1,64], index: 4, kind: input, shape index: {}]   ;;  %s555_s6 = inlined_call_operand.vmem [shape: f32[1,16], index: 6, kind: input, shape index: {}]   ;;  %s556_s8 = inlined_call_operand.vmem [shape: f32[16,128], index: 8, kind: output, shape index: {}]  }
   0x1   :  { %375 = vmatprep.subr.bf16.mxu0 %v434_v0  ;;  %v411_v1 = vld [vmem:[%s548_s1 + $0x8] sm:$0xff]   ;;  %379 = vmatprep.mubr.msk.bf16.mxu0 %vm435_vm0, %v434_v0  ;;  %v412_v2 = vld [vmem:[%s548_s1] sm:$0xff]   ;;  %v414_v3 = vld [vmem:[%s549_s3 + $0x18] sm:$0xff]   ;;  %vm330_vm3 = vcmask 64512   ;;  %vm333_vm4 = vcmask 130048   ;;  %vm336_vm5 = vcmask 195584  }
   0x2   :  { %383 = vmatprep.subr.bf16.mxu1 %v434_v0  ;;  %391 = vmatprep.mubr.msk.bf16.mxu1 %vm435_vm0, %v434_v0  ;;  %v413_v4 = vld [vmem:[%s550_s0] sm:$0xff]   ;;  %v415_v5 = vld [vmem:[%s549_s3 + $0x10] sm:$0xff]   ;;  %v416_v6 = vld [vmem:[%s549_s3 + $0x8] sm:$0xff]  }
   0x3   :  { %376 = vmatpush3.bf16.msra.mxu0 %v411_v1  ;;  %384 = vmatpush3.bf16.msra.mxu1 %v414_v3  ;;  %v417_v7 = vld [vmem:[%s549_s3] sm:$0xff]   ;;  %v418_v8 = vld [vmem:[%s551_s5 + $0x18] sm:$0xff]   ;;  %v419_v19 = vld [vmem:[%s551_s5 + $0x10] sm:$0xff]  }
   0x4   :  { %377 = vmatprep.subr.bf16.mxu0 %v434_v0  ;;  %385 = vmatprep.subr.bf16.mxu1 %v434_v0  ;;  %v345_v9 = vld [vmem:[%s552_s2] ss:$0 sm:$0xff]  ;;  %v420_v20 = vld [vmem:[%s551_s5 + $0x8] sm:$0xff]  }
   0x5   :  { %v421_v21 = vld [vmem:[%s551_s5] sm:$0xff]   ;;  %v291_v23 = vld [vmem:[%s553_s7 + $0x8] sm:$0xff] }
   0x6   :  { %v290_v22 = vld [vmem:[%s553_s7] sm:$0xff] }
   0x7   :  { %378 = vmatpush3.bf16.msra.mxu0 %v412_v2  ;;  %386 = vmatpush3.bf16.msra.mxu1 %v415_v5  ;;  %v350_v24 = vld [vmem:[%s554_s4] ss:$0 sm:$0xff]  ;;  %s437_s4 = smov 120  }
   0x8   :  { %395 = vmatprep.subr.bf16.mxu0 %v434_v0  ;;  %387 = vmatprep.subr.bf16.mxu1 %v434_v0  ;;  %v356_v34 = vld [vmem:[%s555_s6] ss:$0 sm:$0xff] }
   0x9   :  { %294 = vrot.lane.b32.xlu0 %v290_v22, %s436_s27 }
   0xa   :  { %380 = vmatmul.mubr.msk.bf16.vlgmr.msra.gmra.mxu0 %vm60_vm1, %v413_v4 }
   0xb   :  { %403 = vmatprep.mubr.msk.bf16.mxu0 %vm435_vm0, %v434_v0  ;;  %388 = vmatpush3.bf16.msra.mxu1 %v416_v6 }
   0xc   :  { %389 = vmatprep.subr.bf16.mxu1 %v434_v0  ;;  %396 = vmatpush3.bf16.msra.mxu0 %v418_v8 }
   0xd   :  { %397 = vmatprep.subr.bf16.mxu0 %v434_v0  ;;  %296 = vrot.lane.b32.xlu0 %v291_v23, %s436_s27 }
   0xf   :  { %390 = vmatpush3.bf16.msra.mxu1 %v417_v7 }
  0x10   :  { %398 = vmatpush3.bf16.msra.mxu0 %v419_v19 }
  0x11   :  { %399 = vmatprep.subr.bf16.mxu0 %v434_v0 }
  0x14   :  { %400 = vmatpush3.bf16.msra.mxu0 %v420_v20 }
  0x15   :  { %401 = vmatprep.subr.bf16.mxu0 %v434_v0 }
  0x18   :  { %402 = vmatpush3.bf16.msra.mxu0 %v421_v21 }
  0x7b   :  { %v295_v51 = vpop.permute.xlu0 %294 }
  0x7f   :  { %v297_v54 = vpop.permute.xlu0 %296 }
  0xca   :  { %v98_v10 = vpop.f32.mrf.mxu0 }
  0xcb   :  { %v99_v12 = vadd.f32 %v345_v9, %v98_v10 }
  0xcc   :  { %v381_v11 = vpop.f32.mrf.mxu0 }
  0xcd   :  { %v105_v16 = vmax.f32 %v99_v12, 0.0 }
  0xce   :  { %v101_v13 = vpop.f32.mrf.mxu0 }
  0xcf   :  { %v102_v14 = vadd.f32 %v345_v9, %v101_v13 }
  0xd0   :  { %v382_v15 = vpop.f32.mrf.mxu0 }
  0xd1   :  { %v106_v17 = vmax.f32 %v102_v14, 0.0 }
  0xd3   :  { %v107_v18 = vpack.c.bf16 %v106_v17, %v105_v16 }
  0xd5   :  { %392 = vmatmul.mubr.msk.bf16.vlgmr.msra.gmra.mxu1 %vm147_vm2, %v107_v18 }
 0x195   :  { %v185_v25 = vpop.f32.mrf.mxu1 }
 0x196   :  { %v186_v27 = vadd.f32 %v350_v24, %v185_v25 }
 0x197   :  { %v393_v26 = vpop.f32.mrf.mxu1 }
 0x198   :  { %v192_v31 = vmax.f32 %v186_v27, 0.0 }
 0x199   :  { %v188_v28 = vpop.f32.mrf.mxu1 }
 0x19a   :  { %v189_v29 = vadd.f32 %v350_v24, %v188_v28 }
 0x19b   :  { %v394_v30 = vpop.f32.mrf.mxu1 }
 0x19c   :  { %v193_v32 = vmax.f32 %v189_v29, 0.0 }
 0x19e   :  { %v194_v33 = vpack.c.bf16 %v193_v32, %v192_v31 }
 0x1a0   :  { %404 = vmatmul.mubr.msk.bf16.vlgmr.msra.gmra.mxu0 %vm147_vm2, %v194_v33 }
 0x260   :  { %v271_v35 = vpop.f32.mrf.mxu0 }
 0x261   :  { %v272_v36 = vadd.f32 %v356_v34, %v271_v35 }
 0x262   :  { %v405_v37 = vpop.f32.mrf.mxu0 }
 0x263   :  { %422 = vtanh.f32 %v272_v36  ;;  %316 = vrot.lane.b32.xlu0 %v272_v36, %s436_s27 }
 0x264   :  { %v274_v38 = vpop.f32.mrf.mxu0 }
 0x265   :  { %v275_v39 = vadd.f32 %v356_v34, %v274_v38 }
 0x266   :  { %v406_v40 = vpop.f32.mrf.mxu0 }
 0x267   :  { %424 = vtanh.f32 %v275_v39 }
 0x270   :  { %v423_v41 = vpop.eup %422 }
 0x271   :  { %v280_v42 = vadd.f32 1.0, %v423_v41 }
 0x273   :  { %v282_v43 = vmul.f32 3.5, %v280_v42 }
 0x274   :  { %v425_v44 = vpop.eup %424 }
 0x275   :  { %v284_v45 = vadd.f32 -5.0, %v282_v43  ;;  %v281_v46 = vadd.f32 1.0, %v425_v44 }
 0x277   :  { %v286_v47 = vmul.f32 1.442695, %v284_v45  ;;  %v283_v48 = vmul.f32 3.5, %v281_v46 }
 0x279   :  { %426 = vpow2.f32 %v286_v47  ;;  %v285_v49 = vadd.f32 -5.0, %v283_v48 }
 0x27b   :  { %v288_v50 = vmul.f32 1.442695, %v285_v49 }
 0x27d   :  { %428 = vpow2.f32 %v288_v50 }
 0x286   :  { %v427_v52 = vpop.eup %426 }
 0x287   :  { %v300_v53 = vmul.f32 %v427_v52, %v295_v51  ;;  %324 = vrot.lane.b32.xlu0 %v427_v52, %s436_s27 }
 0x289   :  { %304 = vrot.lane.b32.xlu1 %v300_v53, %s437_s4 }
 0x28a   :  { %v429_v55 = vpop.eup %428 }
 0x28b   :  { %v301_v56 = vmul.f32 %v429_v55, %v297_v54 }
 0x28d   :  { %306 = vrot.lane.b32.xlu1 %v301_v56, %s437_s4 }
 0x291   :  { %318 = vrot.lane.b32.xlu1 %v275_v39, %s436_s27 }
 0x295   :  { %326 = vrot.lane.b32.xlu1 %v429_v55, %s436_s27 }
 0x2d5   :  { %v317_v61 = vpop.permute.xlu0 %316 }
 0x2f9   :  { %v325_v0 = vpop.permute.xlu0 %324 }
 0x2fb   :  { %v305_v57 = vpop.permute.xlu1 %304 }
 0x2fc   :  { %v310_v58 = vadd.f32 %v305_v57, %v272_v36 }
 0x2fe   :  { %430 = vtanh.f32 %v310_v58 }
 0x2ff   :  { %v307_v59 = vpop.permute.xlu1 %306 }
 0x300   :  { %v311_v60 = vadd.f32 %v307_v59, %v275_v39 }
 0x302   :  { %432 = vtanh.f32 %v311_v60 }
 0x303   :  { %v319_v62 = vpop.permute.xlu1 %318 }
 0x307   :  { %v327_v6 = vpop.permute.xlu1 %326 }
 0x30b   :  { %v431_v63 = vpop.eup %430 }
 0x30c   :  { %v331_v1 = vsel %vm330_vm3, %v431_v63, %v317_v61 }
 0x30d   :  { %v334_v2 = vsel %vm333_vm4, %v331_v1, %v325_v0 }
 0x30e   :  { %v337_v3 = vsel %vm336_vm5, %v334_v2, 0.0 }
 0x30f   :  { %v433_v4 = vpop.eup %432  ;;  %339 = vst [vmem:[%s556_s8] sm:$0xff] %v337_v3 }
 0x310   :  { %v332_v5 = vsel %vm330_vm3, %v433_v4, %v319_v62 }
 0x311   :  { %v335_v7 = vsel %vm333_vm4, %v332_v5, %v327_v6 }
 0x312   :  { %v338_v8 = vsel %vm336_vm5, %v335_v7, 0.0 }
 0x313   :  { %340 = vst [vmem:[%s556_s8 + $0x8] sm:$0xff] %v338_v8 }

</bundles_post_ra>
